<compile_context>
chip_gen: v7x
topology: tpu7x:2x2x1
jax: 0.10.0
libtpu: 0.0.40
codegen_flags: <defaults>
</compile_context>

<pallas_src>
import numpy as np
import jax
import jax.numpy as jnp
from jax.experimental import pallas as pl
from jax.experimental.pallas import tpu as pltpu

# ---- module hyper-parameters (small, consistent with the PyTorch module) ----
INPUT_SIZE = 16
HIDDEN = 32
N_QUBITS = 4
N_LAYERS = 2
BATCH = 2
DIM = 2 ** N_QUBITS


# --------------------------- parameter setup (glue) --------------------------
def _ry(theta):
    c = jnp.cos(theta / 2.0)
    s = jnp.sin(theta / 2.0)
    return jnp.array([[c, -s], [s, c]], dtype=jnp.float32)


def build_circuit_unitary(q_weights, n_qubits, n_layers):
    """Real unitary of the trainable part: per-layer RY on every wire + CNOT chain."""
    cnot = jnp.array(
        [[1, 0, 0, 0],
         [0, 1, 0, 0],
         [0, 0, 0, 1],
         [0, 0, 1, 0]], dtype=jnp.float32)
    eye = lambda k: jnp.eye(2 ** k, dtype=jnp.float32)
    U = jnp.eye(2 ** n_qubits, dtype=jnp.float32)
    for layer in range(n_layers):
        # RY on each wire; wire 0 = leftmost kron factor (MSB)
        R = jnp.array([[1.0]], dtype=jnp.float32)
        for i in range(n_qubits):
            R = jnp.kron(R, _ry(q_weights[layer * n_qubits + i]))
        U = R @ U
        # CNOT chain wires [i, i+1]
        for i in range(n_qubits - 1):
            C = jnp.kron(jnp.kron(eye(i), cnot), eye(n_qubits - i - 2))
            U = C @ U
    return U


# ------------------------------ Pallas kernel --------------------------------
def hybrid_kernel(x_ref, w1t_ref, b1_ref, w2t_ref, b2_ref, ut_ref, out_ref):
    # classical MLP (dropout is identity at inference); weights pre-transposed
    x = x_ref[...]                                                    # (TB, IN)
    h = jnp.dot(x, w1t_ref[...], preferred_element_type=jnp.float32) + b1_ref[...]
    h = jnp.maximum(h, 0.0)                                           # ReLU
    c = jnp.dot(h, w2t_ref[...], preferred_element_type=jnp.float32) + b2_ref[...]

    # Exact closed form for cos/sin of half the RY angle, theta = arctan(c)+pi/2:
    #   theta/2 in (0, pi/2) -> both amplitudes non-negative.
    r = jax.lax.rsqrt(1.0 + c * c)                                    # EUP rsqrt
    cr = c * r                                                        # sin(arctan(c))
    cos_h = jnp.sqrt(0.5 * (1.0 - cr))                                # (TB, n_qubits)
    sin_h = jnp.sqrt(0.5 * (1.0 + cr))
    diff = sin_h - cos_h                                              # hoisted

    # basis-state bit table generated in-kernel (wire 0 = MSB); also build
    # z_row[s] = n_qubits - 2*popcount(s) on the fly.
    s_idx = jax.lax.broadcasted_iota(jnp.int32, (1, DIM), 1)          # (1, 2^n)
    z_row = jnp.full((1, DIM), float(N_QUBITS), dtype=jnp.float32)

    # product-state statevector psi0[b, s] = prod_i amp_i(bit_i(s))
    psi0 = None
    for i in range(N_QUBITS):                                         # static unroll
        bit_i = ((s_idx >> (N_QUBITS - 1 - i)) & 1).astype(jnp.float32)   # (1, 2^n)
        z_row = z_row - 2.0 * bit_i
        amp_i = cos_h[:, i:i + 1] + diff[:, i:i + 1] * bit_i              # (TB, 2^n)
        psi0 = amp_i if psi0 is None else psi0 * amp_i

    # apply variational unitary (pre-transposed), then sum_i <Z_i> via
    # VPU multiply + lane reduce (no 1-lane-wide MXU matmul).
    psi = jnp.dot(psi0, ut_ref[...], preferred_element_type=jnp.float32)
    probs = psi * psi
    out_ref[...] = jnp.sum(probs * z_row, axis=-1, keepdims=True)     # (TB, 1)


def hybrid_forward(x, w1, b1, w2, b2, U):
    B = x.shape[0]
    # batch tile: sublane-aligned block, grid tiled over the (parallel) batch axis
    TB = min(128, ((B + 7) // 8) * 8)
    padded_B = ((B + TB - 1) // TB) * TB
    if padded_B != B:
        x = jnp.pad(x, ((0, padded_B - B), (0, 0)))

    # pre-transpose once at trace time (no in-kernel relayouts)
    w1t, w2t, ut = w1.T, w2.T, U.T

    const2d = lambda a: pl.BlockSpec(a.shape, lambda i: (0, 0))
    out = pl.pallas_call(
        hybrid_kernel,
        out_shape=jax.ShapeDtypeStruct((padded_B, 1), jnp.float32),
        grid=(padded_B // TB,),
        in_specs=[
            pl.BlockSpec((TB, INPUT_SIZE), lambda i: (i, 0)),
            const2d(w1t), const2d(b1), const2d(w2t), const2d(b2), const2d(ut),
        ],
        out_specs=pl.BlockSpec((TB, 1), lambda i: (i, 0)),
        compiler_params=pltpu.CompilerParams(dimension_semantics=("parallel",)),
    )(x, w1t, b1, w2t, b2, ut)
    return out[:B, 0]                                                 # (B,)


# ---------------------------- pure-JAX reference ------------------------------
def reference(x, w1, b1, w2, b2, U, bits, z):
    h = jnp.maximum(x @ w1.T + b1, 0.0)
    c = h @ w2.T + b2
    theta = jnp.arctan(c) + 0.5 * jnp.pi          # original arctan/cos/sin form
    cos_h, sin_h = jnp.cos(theta / 2), jnp.sin(theta / 2)
    psi0 = jnp.ones((x.shape[0], DIM), jnp.float32)
    for i in range(N_QUBITS):
        psi0 = psi0 * (cos_h[:, i:i + 1] * (1 - bits[i:i + 1]) +
                       sin_h[:, i:i + 1] * bits[i:i + 1])
    psi = psi0 @ U.T
    return (psi * psi) @ z[:, 0]


# ----------------------------------- main -------------------------------------
if __name__ == "__main__":
    key = jax.random.PRNGKey(0)
    kx, k1, k2, k3, k4, kq = jax.random.split(key, 6)

    x = jax.random.normal(kx, (BATCH, INPUT_SIZE), jnp.float32)

    # deterministic parameter init (PyTorch-like uniform bounds; values synthetic)
    lim1 = 1.0 / np.sqrt(INPUT_SIZE)
    lim2 = 1.0 / np.sqrt(HIDDEN)
    w1 = jax.random.uniform(k1, (HIDDEN, INPUT_SIZE), jnp.float32, -lim1, lim1)
    b1 = jax.random.uniform(k2, (1, HIDDEN), jnp.float32, -lim1, lim1)
    w2 = jax.random.uniform(k3, (N_QUBITS, HIDDEN), jnp.float32, -lim2, lim2)
    b2 = jax.random.uniform(k4, (1, N_QUBITS), jnp.float32, -lim2, lim2)
    q_weights = jax.random.uniform(kq, (N_LAYERS * N_QUBITS,), jnp.float32,
                                   -np.pi, np.pi)

    # fold the (input-independent) variational circuit into one real unitary
    U = build_circuit_unitary(q_weights, N_QUBITS, N_LAYERS)

    # reference-only constants: bit table (wire 0 = MSB), z[s] = n - 2*popcount(s)
    s_idx = np.arange(DIM)
    bits_np = np.stack([(s_idx >> (N_QUBITS - 1 - i)) & 1
                        for i in range(N_QUBITS)]).astype(np.float32)
    bits = jnp.asarray(bits_np)
    z = jnp.asarray((N_QUBITS - 2.0 * bits_np.sum(0)).reshape(DIM, 1),
                    dtype=jnp.float32)

    run = jax.jit(hybrid_forward)
    out = run(x, w1, b1, w2, b2, U)
    out = jax.block_until_ready(out)

    ref = reference(x, w1, b1, w2, b2, U, bits, z)
    assert out.shape == (BATCH,)
    assert jnp.allclose(out, ref, atol=1e-4, rtol=1e-4)

    print("KERNEL_OK")
</pallas_src>

<mosaic_0001>
module attributes {stable_mosaic.version = 11 : i64} {
  func.func @hybrid_kernel(%arg0: i32, %arg1: memref<8x16xf32, #tpu.memory_space<vmem>>, %arg2: memref<16x32xf32, #tpu.memory_space<vmem>>, %arg3: memref<1x32xf32, #tpu.memory_space<vmem>>, %arg4: memref<32x4xf32, #tpu.memory_space<vmem>>, %arg5: memref<1x4xf32, #tpu.memory_space<vmem>>, %arg6: memref<16x16xf32, #tpu.memory_space<vmem>>, %arg7: memref<8x1xf32, #tpu.memory_space<vmem>>) attributes {dimension_semantics = [#tpu.dimension_semantics<parallel>], iteration_bounds = array<i64: 1>, scalar_prefetch = 0 : i64, scratch_operands = 0 : i64, tpu.core_type = #tpu.core_type<tc>, window_params = [{transform_indices = @transform_0, window_bounds = array<i64: 8, 16>}, {pipeline_mode = #tpu.pipeline_mode<synchronous>, transform_indices = @transform_1, window_bounds = array<i64: 16, 32>}, {pipeline_mode = #tpu.pipeline_mode<synchronous>, transform_indices = @transform_2, window_bounds = array<i64: 1, 32>}, {pipeline_mode = #tpu.pipeline_mode<synchronous>, transform_indices = @transform_3, window_bounds = array<i64: 32, 4>}, {pipeline_mode = #tpu.pipeline_mode<synchronous>, transform_indices = @transform_4, window_bounds = array<i64: 1, 4>}, {pipeline_mode = #tpu.pipeline_mode<synchronous>, transform_indices = @transform_5, window_bounds = array<i64: 16, 16>}, {transform_indices = @transform_6, window_bounds = array<i64: 8, 1>}]} {
    %c0 = arith.constant 0 : index
    %c0_0 = arith.constant 0 : index
    %0 = vector.load %arg1[%c0, %c0_0] : memref<8x16xf32, #tpu.memory_space<vmem>>, vector<8x16xf32>
    %c0_1 = arith.constant 0 : index
    %c0_2 = arith.constant 0 : index
    %1 = vector.load %arg2[%c0_1, %c0_2] : memref<16x32xf32, #tpu.memory_space<vmem>>, vector<16x32xf32>
    %cst = arith.constant dense<0.000000e+00> : vector<8x32xf32>
    %2 = tpu.matmul %0, %1, %cst {dimension_numbers = #tpu.dot_dimension_numbers<[1], [0], [0], [1], [0, 0, 1, 1], [], []>} : vector<8x16xf32>, vector<16x32xf32>, vector<8x32xf32> -> vector<8x32xf32>
    %c0_3 = arith.constant 0 : index
    %c0_4 = arith.constant 0 : index
    %3 = vector.load %arg3[%c0_3, %c0_4] : memref<1x32xf32, #tpu.memory_space<vmem>>, vector<1x32xf32>
    %4 = vector.broadcast %3 : vector<1x32xf32> to vector<8x32xf32>
    %5 = arith.addf %2, %4 : vector<8x32xf32>
    %cst_5 = arith.constant 0.000000e+00 : f32
    %6 = vector.broadcast %cst_5 : f32 to vector<8x32xf32>
    %7 = arith.maximumf %5, %6 : vector<8x32xf32>
    %c0_6 = arith.constant 0 : index
    %c0_7 = arith.constant 0 : index
    %8 = vector.load %arg4[%c0_6, %c0_7] : memref<32x4xf32, #tpu.memory_space<vmem>>, vector<32x4xf32>
    %cst_8 = arith.constant dense<0.000000e+00> : vector<8x4xf32>
    %9 = tpu.matmul %7, %8, %cst_8 {dimension_numbers = #tpu.dot_dimension_numbers<[1], [0], [0], [1], [0, 0, 1, 1], [], []>} : vector<8x32xf32>, vector<32x4xf32>, vector<8x4xf32> -> vector<8x4xf32>
    %c0_9 = arith.constant 0 : index
    %c0_10 = arith.constant 0 : index
    %10 = vector.load %arg5[%c0_9, %c0_10] : memref<1x4xf32, #tpu.memory_space<vmem>>, vector<1x4xf32>
    %11 = vector.broadcast %10 : vector<1x4xf32> to vector<8x4xf32>
    %12 = arith.addf %9, %11 : vector<8x4xf32>
    %13 = arith.mulf %12, %12 : vector<8x4xf32>
    %cst_11 = arith.constant 1.000000e+00 : f32
    %14 = vector.broadcast %cst_11 : f32 to vector<8x4xf32>
    %15 = arith.addf %14, %13 : vector<8x4xf32>
    %16 = math.rsqrt %15 : vector<8x4xf32>
    %17 = arith.mulf %12, %16 : vector<8x4xf32>
    %cst_12 = arith.constant 1.000000e+00 : f32
    %18 = vector.broadcast %cst_12 : f32 to vector<8x4xf32>
    %19 = arith.subf %18, %17 : vector<8x4xf32>
    %cst_13 = arith.constant 5.000000e-01 : f32
    %20 = vector.broadcast %cst_13 : f32 to vector<8x4xf32>
    %21 = arith.mulf %20, %19 : vector<8x4xf32>
    %22 = math.sqrt %21 : vector<8x4xf32>
    %cst_14 = arith.constant 1.000000e+00 : f32
    %23 = vector.broadcast %cst_14 : f32 to vector<8x4xf32>
    %24 = arith.addf %23, %17 : vector<8x4xf32>
    %cst_15 = arith.constant 5.000000e-01 : f32
    %25 = vector.broadcast %cst_15 : f32 to vector<8x4xf32>
    %26 = arith.mulf %25, %24 : vector<8x4xf32>
    %27 = math.sqrt %26 : vector<8x4xf32>
    %28 = arith.subf %27, %22 : vector<8x4xf32>
    %29 = tpu.iota {dimensions = array<i32: 1>} : vector<1x16xi32>
    %cst_16 = arith.constant 4.000000e+00 : f32
    %30 = vector.broadcast %cst_16 : f32 to vector<1x16xf32>
    %c3_i32 = arith.constant 3 : i32
    %31 = vector.broadcast %c3_i32 : i32 to vector<1x16xi32>
    %32 = arith.shrsi %29, %31 : vector<1x16xi32>
    %c1_i32 = arith.constant 1 : i32
    %33 = vector.broadcast %c1_i32 : i32 to vector<1x16xi32>
    %34 = arith.andi %32, %33 : vector<1x16xi32>
    %35 = arith.sitofp %34 : vector<1x16xi32> to vector<1x16xf32>
    %cst_17 = arith.constant 2.000000e+00 : f32
    %36 = vector.broadcast %cst_17 : f32 to vector<1x16xf32>
    %37 = arith.mulf %36, %35 : vector<1x16xf32>
    %38 = arith.subf %30, %37 : vector<1x16xf32>
    %39 = vector.extract_strided_slice %22 {offsets = [0, 0], sizes = [8, 1], strides = [1, 1]} : vector<8x4xf32> to vector<8x1xf32>
    %40 = vector.extract_strided_slice %28 {offsets = [0, 0], sizes = [8, 1], strides = [1, 1]} : vector<8x4xf32> to vector<8x1xf32>
    %41 = vector.broadcast %40 : vector<8x1xf32> to vector<8x16xf32>
    %42 = vector.broadcast %35 : vector<1x16xf32> to vector<8x16xf32>
    %43 = arith.mulf %41, %42 : vector<8x16xf32>
    %44 = vector.broadcast %39 : vector<8x1xf32> to vector<8x16xf32>
    %45 = arith.addf %44, %43 : vector<8x16xf32>
    %c2_i32 = arith.constant 2 : i32
    %46 = vector.broadcast %c2_i32 : i32 to vector<1x16xi32>
    %47 = arith.shrsi %29, %46 : vector<1x16xi32>
    %c1_i32_18 = arith.constant 1 : i32
    %48 = vector.broadcast %c1_i32_18 : i32 to vector<1x16xi32>
    %49 = arith.andi %47, %48 : vector<1x16xi32>
    %50 = arith.sitofp %49 : vector<1x16xi32> to vector<1x16xf32>
    %cst_19 = arith.constant 2.000000e+00 : f32
    %51 = vector.broadcast %cst_19 : f32 to vector<1x16xf32>
    %52 = arith.mulf %51, %50 : vector<1x16xf32>
    %53 = arith.subf %38, %52 : vector<1x16xf32>
    %54 = vector.extract_strided_slice %22 {offsets = [0, 1], sizes = [8, 1], strides = [1, 1]} : vector<8x4xf32> to vector<8x1xf32>
    %55 = vector.extract_strided_slice %28 {offsets = [0, 1], sizes = [8, 1], strides = [1, 1]} : vector<8x4xf32> to vector<8x1xf32>
    %56 = vector.broadcast %55 : vector<8x1xf32> to vector<8x16xf32>
    %57 = vector.broadcast %50 : vector<1x16xf32> to vector<8x16xf32>
    %58 = arith.mulf %56, %57 : vector<8x16xf32>
    %59 = vector.broadcast %54 : vector<8x1xf32> to vector<8x16xf32>
    %60 = arith.addf %59, %58 : vector<8x16xf32>
    %61 = arith.mulf %45, %60 : vector<8x16xf32>
    %c1_i32_20 = arith.constant 1 : i32
    %62 = vector.broadcast %c1_i32_20 : i32 to vector<1x16xi32>
    %63 = arith.shrsi %29, %62 : vector<1x16xi32>
    %c1_i32_21 = arith.constant 1 : i32
    %64 = vector.broadcast %c1_i32_21 : i32 to vector<1x16xi32>
    %65 = arith.andi %63, %64 : vector<1x16xi32>
    %66 = arith.sitofp %65 : vector<1x16xi32> to vector<1x16xf32>
    %cst_22 = arith.constant 2.000000e+00 : f32
    %67 = vector.broadcast %cst_22 : f32 to vector<1x16xf32>
    %68 = arith.mulf %67, %66 : vector<1x16xf32>
    %69 = arith.subf %53, %68 : vector<1x16xf32>
    %70 = vector.extract_strided_slice %22 {offsets = [0, 2], sizes = [8, 1], strides = [1, 1]} : vector<8x4xf32> to vector<8x1xf32>
    %71 = vector.extract_strided_slice %28 {offsets = [0, 2], sizes = [8, 1], strides = [1, 1]} : vector<8x4xf32> to vector<8x1xf32>
    %72 = vector.broadcast %71 : vector<8x1xf32> to vector<8x16xf32>
    %73 = vector.broadcast %66 : vector<1x16xf32> to vector<8x16xf32>
    %74 = arith.mulf %72, %73 : vector<8x16xf32>
    %75 = vector.broadcast %70 : vector<8x1xf32> to vector<8x16xf32>
    %76 = arith.addf %75, %74 : vector<8x16xf32>
    %77 = arith.mulf %61, %76 : vector<8x16xf32>
    %c0_i32 = arith.constant 0 : i32
    %78 = vector.broadcast %c0_i32 : i32 to vector<1x16xi32>
    %79 = arith.shrsi %29, %78 : vector<1x16xi32>
    %c1_i32_23 = arith.constant 1 : i32
    %80 = vector.broadcast %c1_i32_23 : i32 to vector<1x16xi32>
    %81 = arith.andi %79, %80 : vector<1x16xi32>
    %82 = arith.sitofp %81 : vector<1x16xi32> to vector<1x16xf32>
    %cst_24 = arith.constant 2.000000e+00 : f32
    %83 = vector.broadcast %cst_24 : f32 to vector<1x16xf32>
    %84 = arith.mulf %83, %82 : vector<1x16xf32>
    %85 = arith.subf %69, %84 : vector<1x16xf32>
    %86 = vector.extract_strided_slice %22 {offsets = [0, 3], sizes = [8, 1], strides = [1, 1]} : vector<8x4xf32> to vector<8x1xf32>
    %87 = vector.extract_strided_slice %28 {offsets = [0, 3], sizes = [8, 1], strides = [1, 1]} : vector<8x4xf32> to vector<8x1xf32>
    %88 = vector.broadcast %87 : vector<8x1xf32> to vector<8x16xf32>
    %89 = vector.broadcast %82 : vector<1x16xf32> to vector<8x16xf32>
    %90 = arith.mulf %88, %89 : vector<8x16xf32>
    %91 = vector.broadcast %86 : vector<8x1xf32> to vector<8x16xf32>
    %92 = arith.addf %91, %90 : vector<8x16xf32>
    %93 = arith.mulf %77, %92 : vector<8x16xf32>
    %c0_25 = arith.constant 0 : index
    %c0_26 = arith.constant 0 : index
    %94 = vector.load %arg6[%c0_25, %c0_26] : memref<16x16xf32, #tpu.memory_space<vmem>>, vector<16x16xf32>
    %cst_27 = arith.constant dense<0.000000e+00> : vector<8x16xf32>
    %95 = tpu.matmul %93, %94, %cst_27 {dimension_numbers = #tpu.dot_dimension_numbers<[1], [0], [0], [1], [0, 0, 1, 1], [], []>} : vector<8x16xf32>, vector<16x16xf32>, vector<8x16xf32> -> vector<8x16xf32>
    %96 = arith.mulf %95, %95 : vector<8x16xf32>
    %97 = vector.broadcast %85 : vector<1x16xf32> to vector<8x16xf32>
    %98 = arith.mulf %96, %97 : vector<8x16xf32>
    %cst_28 = arith.constant dense<0.000000e+00> : vector<8xf32>
    %99 = vector.multi_reduction <add>, %98, %cst_28 [1] : vector<8x16xf32> to vector<8xf32>
    %100 = vector.shape_cast %99 : vector<8xf32> to vector<8x1xf32>
    %c0_29 = arith.constant 0 : index
    %c0_30 = arith.constant 0 : index
    %101 = vector.load %arg7[%c0_29, %c0_30] : memref<8x1xf32, #tpu.memory_space<vmem>>, vector<8x1xf32>
    tpu.vector_store %arg7[%c0_29, %c0_30], %100 {strides = array<i32>} : memref<8x1xf32, #tpu.memory_space<vmem>>, vector<8x1xf32>,
    return
  }
  func.func @transform_0(%arg0: i32) -> (i32, i32) {
    %c0_i32 = arith.constant 0 : i32
    %c0_i32_0 = arith.constant 0 : i32
    return %arg0, %c0_i32 : i32, i32
  }
  func.func @transform_1(%arg0: i32) -> (i32, i32) {
    %c0_i32 = arith.constant 0 : i32
    %c0_i32_0 = arith.constant 0 : i32
    %c0_i32_1 = arith.constant 0 : i32
    return %c0_i32, %c0_i32_0 : i32, i32
  }
  func.func @transform_2(%arg0: i32) -> (i32, i32) {
    %c0_i32 = arith.constant 0 : i32
    %c0_i32_0 = arith.constant 0 : i32
    %c0_i32_1 = arith.constant 0 : i32
    return %c0_i32, %c0_i32_0 : i32, i32
  }
  func.func @transform_3(%arg0: i32) -> (i32, i32) {
    %c0_i32 = arith.constant 0 : i32
    %c0_i32_0 = arith.constant 0 : i32
    %c0_i32_1 = arith.constant 0 : i32
    return %c0_i32, %c0_i32_0 : i32, i32
  }
  func.func @transform_4(%arg0: i32) -> (i32, i32) {
    %c0_i32 = arith.constant 0 : i32
    %c0_i32_0 = arith.constant 0 : i32
    %c0_i32_1 = arith.constant 0 : i32
    return %c0_i32, %c0_i32_0 : i32, i32
  }
  func.func @transform_5(%arg0: i32) -> (i32, i32) {
    %c0_i32 = arith.constant 0 : i32
    %c0_i32_0 = arith.constant 0 : i32
    %c0_i32_1 = arith.constant 0 : i32
    return %c0_i32, %c0_i32_0 : i32, i32
  }
  func.func @transform_6(%arg0: i32) -> (i32, i32) {
    %c0_i32 = arith.constant 0 : i32
    %c0_i32_0 = arith.constant 0 : i32
    return %arg0, %c0_i32 : i32, i32
  }
}

</mosaic_0001>

<bundles_post_ra>
// kernel: hybrid_forward.1
= control target key start
LH: loop header
LB: loop body
LE: loop exit
PB: predicated region body
PF: predicated region fallthrough
CT: control target
= control target key end

     0   :  { %v442_v0 = vmov 0.0|0.0   ;;  %vm443_vm0 = vmmov 0   ;;  %v444_v3 = vmov 0.0   ;;  %vm33_vm1 = vcmask 130048   ;;  %s526_s1 = inlined_call_operand.vmem [shape: f32[16,32], index: 1, kind: input, shape index: {}]   ;;  %s527_s3 = inlined_call_operand.vmem [shape: f32[32,4], index: 3, kind: input, shape index: {}]   ;;  %s528_s0 = inlined_call_operand.vmem [shape: f32[8,16], index: 0, kind: input, shape index: {}]   ;;  %s529_s2 = inlined_call_operand.vmem [shape: f32[1,32], index: 2, kind: input, shape index: {}]   ;;  %s530_s4 = inlined_call_operand.vmem [shape: f32[1,4], index: 4, kind: input, shape index: {}]   ;;  %s531_s5 = inlined_call_operand.vmem [shape: f32[16,16], index: 5, kind: input, shape index: {}]   ;;  %s532_s6 = inlined_call_operand.vmem [shape: f32[8,1], index: 6, kind: output, shape index: {}]  }
   0x1   :  { %409 = vmatprep.subr.bf16.mxu0 %v442_v0  ;;  %v24_v1 = vld [vmem:[%s526_s1] sm:$0xff]  ;;  %v25_v2 = vld [vmem:[%s526_s1 + $0x8] sm:$0xff]  ;;  %388 = vmatprep.mubr.msk.f32.mxu0 %vm443_vm0, %v444_v3  ;;  %v110_v9 = vld [vmem:[%s527_s3 + $0x10] sm:$0xff]  ;;  %vm119_vm2 = vcmask 261120   ;;  %v445_v17 = vmov 0   ;;  %v446_v41 = vmov 1   ;;  %v216_v47 = vlaneseq }
   0x2   :  { %v410_v4 = vpack.c.bf16 %v25_v2, %v24_v1  ;;  %412 = vmatprep.subr.bf16.mxu1 %v442_v0  ;;  %v108_v5 = vld [vmem:[%s527_s3] sm:$0xff]  ;;  %v109_v6 = vld [vmem:[%s527_s3 + $0x8] sm:$0xff]  ;;  %399 = vmatprep.mubr.msk.f32.mxu1 %vm443_vm0, %v444_v3  ;;  %v111_v10 = vld [vmem:[%s527_s3 + $0x18] sm:$0xff]  ;;  %v447_v42 = vmov 2   ;;  %v448_v43 = vmov 3   ;;  %vm362_vm7 = vcmask 7168  }
   0x3   :  { %v413_v7 = vpack.c.bf16 %v109_v6, %v108_v5  ;;  %v23_v8 = vld [vmem:[%s528_s0] sm:$0xff]  ;;  %v416_v11 = vpack.c.bf16 %v111_v10, %v110_v9  ;;  %428 = vset.pattern.permute.xlu1 %v445_v17  ;;  %430 = vset.pattern.permute.xlu0 %v445_v17  ;;  %v283_v45 = vld [vmem:[%s531_s5 + $0x8] sm:$0xff]  ;;  %v217_v48 = vand.u32 127, %v216_v47 }
   0x4   :  { %411 = vmatpush3.bf16.msra.mxu0 %v410_v4  ;;  %v368_v12 = vld [vmem:[%s529_s2] ss:$0 sm:$0xff] }
   0x5   :  { %414 = vmatpush3.bf16.msra.mxu1 %v413_v7  ;;  %418 = vmatprep.subr.bf16.mxu0 %v442_v0  ;;  %v370_v18 = vld [vmem:[%s530_s4] ss:$0 sm:$0xff]  ;;  %v235_v49 = vshra.s32 %v217_v48, 2  ;;  %v218_v50 = vshra.s32 %v217_v48, 3  ;;  %v251_v52 = vshra.s32 %v217_v48, 1  ;;  %v267_v1 = vand.u32 1, %v217_v48 }
   0x6   :  { %415 = vmatprep.subr.bf16.mxu1 %v442_v0  ;;  %v282_v44 = vld [vmem:[%s531_s5] sm:$0xff] }
   0x7   :  { %389 = vmatmul.mubr.msk.f32.vlgmr.msra.gmra.mrb[0].mxu0 %vm33_vm1, %v23_v8  ;;  %v419_v46 = vpack.c.bf16 %v283_v45, %v282_v44  ;;  %v236_v53 = vand.u32 1, %v235_v49  ;;  %v219_v54 = vand.u32 1, %v218_v50  ;;  %v252_v56 = vand.u32 1, %v251_v52 }
   0x8   :  { %406 = vmatprep.mubr.msk.f32.mxu0 %vm443_vm0, %v444_v3  ;;  %v268_v6 = vcvt.s32.f32 %v267_v1 }
   0x9   :  { %417 = vmatpush3.bf16.msra.mxu1 %v416_v11  ;;  %420 = vmatpush3.bf16.msra.mxu0 %v419_v46  ;;  %v237_v58 = vcvt.s32.f32 %v236_v53  ;;  %v220_v59 = vcvt.s32.f32 %v219_v54  ;;  %v253_v61 = vcvt.s32.f32 %v252_v56 }
   0xb   :  { %v238_v17 = vmul.f32 2.0, %v237_v58 }
  0xda   :  { %v103_v13 = vpop.f32.mrb[0].mxu0 }
  0xdb   :  { %v104_v14 = vadd.f32 %v368_v12, %v103_v13  ;;  %v390_v15 = vpop.f32.mrb[1].mxu0 }
  0xdc   :  { %v221_v15 = vmul.f32 2.0, %v220_v59 }
  0xdd   :  { %v107_v16 = vmax.f32 %v104_v14, 0.0 }
  0xdf   :  { %400 = vmatmul.mubr.msk.f32.vlgmr.msra.gmra.mrb[0].mxu1 %vm119_vm2, %v107_v16  ;;  %v222_v16 = vsub.f32 4.0, %v221_v15 }
 0x1b2   :  { %v189_v19 = vpop.f32.mrb[0].mxu1 }
 0x1b3   :  { %v190_v20 = vadd.f32 %v370_v18, %v189_v19  ;;  %v401_v21 = vpop.f32.mrb[1].mxu1  ;;  %v239_v18 = vsub.f32 %v222_v16, %v238_v17  ;;  %v254_v19 = vmul.f32 2.0, %v253_v61 }
 0x1b5   :  { %v193_v22 = vmul.f32 %v190_v20, %v190_v20  ;;  %v255_v21 = vsub.f32 %v239_v18, %v254_v19 }
 0x1b7   :  { %v194_v23 = vadd.f32 1.0, %v193_v22 }
 0x1b9   :  { %436 = vrsqrt.f32 %v194_v23 }
 0x1c3   :  { %v437_v24 = vpop.eup %436 }
 0x1c4   :  { %v196_v25 = vmul.f32 %v437_v24, %v190_v20  ;;  %v269_v20 = vmul.f32 2.0, %v268_v6 }
 0x1c6   :  { %v197_v26 = vsub.f32 1.0, %v196_v25  ;;  %v206_v27 = vadd.f32 1.0, %v196_v25  ;;  %v270_v22 = vsub.f32 %v255_v21, %v269_v20 }
 0x1c8   :  { %v198_v28 = vmul.f32 0.5, %v197_v26  ;;  %v207_v29 = vmul.f32 0.5, %v206_v27 }
 0x1ca   :  { %438 = vrsqrt.f32 %v198_v28  ;;  %vm201_vm3 = vcmp.eq.f32.partialorder %v198_v28, inf  ;;  %v204_v33 = vand.u32 2147483648, %v198_v28  ;;  %vm203_vm4 = vcmp.eq.f32.partialorder %v198_v28, 0.0 }
 0x1cb   :  { %440 = vrsqrt.f32 %v207_v29  ;;  %vm210_vm5 = vcmp.eq.f32.partialorder %v207_v29, inf  ;;  %v213_v36 = vand.u32 2147483648, %v207_v29  ;;  %vm212_vm6 = vcmp.eq.f32.partialorder %v207_v29, 0.0 }
 0x1d4   :  { %v439_v30 = vpop.eup %438 }
 0x1d5   :  { %v441_v31 = vpop.eup %440  ;;  %v200_v32 = vmul.f32 %v439_v30, %v198_v28 }
 0x1d6   :  { %v209_v34 = vmul.f32 %v441_v31, %v207_v29 }
 0x1d7   :  { %v202_v35 = vsel %vm201_vm3, %v198_v28, %v200_v32 }
 0x1d8   :  { %v205_v37 = vsel %vm203_vm4, %v204_v33, %v202_v35  ;;  %v211_v38 = vsel %vm210_vm5, %v207_v29, %v209_v34 }
 0x1d9   :  { %231 = vperm.xlu1 %428, %v205_v37   ;;  %v214_v39 = vsel %vm212_vm6, %v213_v36, %v211_v38 }
 0x1da   :  { %v215_v40 = vsub.f32 %v214_v39, %v205_v37 }
 0x1dc   :  { %225 = vperm.xlu0 %430, %v215_v40  }
 0x1dd   :  { %429 = vset.pattern.permute.xlu1 %v446_v41 }
 0x1de   :  { %246 = vperm.xlu1 %429, %v205_v37  }
 0x1e0   :  { %431 = vset.pattern.permute.xlu0 %v446_v41 }
 0x1e1   :  { %241 = vperm.xlu0 %431, %v215_v40  }
 0x1e2   :  { %433 = vset.pattern.permute.xlu1 %v447_v42 }
 0x1e3   :  { %257 = vperm.xlu1 %433, %v215_v40  }
 0x1e5   :  { %432 = vset.pattern.permute.xlu0 %v447_v42 }
 0x1e6   :  { %262 = vperm.xlu0 %432, %v205_v37  }
 0x1e7   :  { %434 = vset.pattern.permute.xlu1 %v448_v43 }
 0x1e8   :  { %272 = vperm.xlu1 %434, %v215_v40  }
 0x1ea   :  { %435 = vset.pattern.permute.xlu0 %v448_v43 }
 0x1ec   :  { %277 = vperm.xlu1 %434, %v205_v37  }
 0x258   :  { %v232_v51 = vpop.permute.xlu1 %231 }
 0x25b   :  { %v226_v55 = vpop.permute.xlu0 %225 }
 0x25c   :  { %v228_v63 = vmul.f32 %v226_v55, %v220_v59 }
 0x25d   :  { %v247_v57 = vpop.permute.xlu1 %246 }
 0x25e   :  { %v234_v5 = vadd.f32 %v232_v51, %v228_v63 }
 0x260   :  { %v242_v60 = vpop.permute.xlu0 %241 }
 0x261   :  { %v244_v62 = vmul.f32 %v242_v60, %v237_v58 }
 0x262   :  { %v258_v0 = vpop.permute.xlu1 %257 }
 0x263   :  { %v249_v2 = vadd.f32 %v247_v57, %v244_v62  ;;  %v260_v3 = vmul.f32 %v258_v0, %v253_v61 }
 0x265   :  { %v263_v4 = vpop.permute.xlu0 %262  ;;  %v250_v8 = vmul.f32 %v249_v2, %v234_v5 }
 0x266   :  { %v265_v9 = vadd.f32 %v263_v4, %v260_v3 }
 0x267   :  { %v273_v7 = vpop.permute.xlu1 %272 }
 0x268   :  { %v275_v10 = vmul.f32 %v273_v7, %v268_v6  ;;  %v266_v12 = vmul.f32 %v265_v9, %v250_v8 }
 0x26b   :  { %v278_v11 = vpop.permute.xlu1 %277 }
 0x26c   :  { %v280_v13 = vadd.f32 %v278_v11, %v275_v10 }
 0x26e   :  { %v281_v14 = vmul.f32 %v280_v13, %v266_v12 }
 0x270   :  { %407 = vmatmul.mubr.msk.f32.vlgmr.msra.gmra.mrb[2].mxu0 %vm33_vm1, %v281_v14 }
 0x343   :  { %v353_v23 = vpop.f32.mrb[2].mxu0 }
 0x344   :  { %v357_v24 = vmul.f32 %v353_v23, %v353_v23  ;;  %v408_v25 = vpop.f32.mrb[3].mxu0 }
 0x346   :  { %v358_v26 = vmul.f32 %v357_v24, %v270_v22 }
 0x348   :  { %v359_v27 = vsel %vm33_vm1, %v358_v26, 0.0 }
 0x349   :  { %360 = vadd.xlane.f32.xlu0 %v359_v27 }
 0x3d6   :  { %v361_v28 = vpop.xlane.xlu0 %360 }
 0x3d7   :  { %363 = vst.msk [vmem:[%s532_s6] sm:$0xff] %vm362_vm7, %v361_v28 }

</bundles_post_ra>
